<compile_context>
chip_gen: v7x
topology: tpu7x:2x2x1
jax: 0.10.0
libtpu: 0.0.40
codegen_flags: <defaults>
</compile_context>

<pallas_src>
import functools
import math

import jax
import jax.numpy as jnp
from jax.experimental import pallas as pl
from jax.experimental.pallas import tpu as pltpu

_OUT_LANES = 128                    # lane-dense output slab width (one vreg)
_LOG2E = 1.4426950408889634


def _round_up(x: int, m: int) -> int:
    return ((x + m - 1) // m) * m


# ----------------------------------------------------------------------------
# Kernel 1: fused QKV projection.
#   y = X_tile @ [Wq*scale | Wk | Wv]  -> (tm, 3*dk), split into three outputs.
#   Wq is pre-scaled by log2(e)/sqrt(dk) in the wrapper (exp2 trick).
# ----------------------------------------------------------------------------
def _project_qkv_kernel(x_ref, w_ref, q_ref, k_ref, v_ref, *, dk):
    y = jnp.dot(x_ref[...].astype(w_ref.dtype), w_ref[...],
                preferred_element_type=jnp.float32)          # (tm, 3*dk) f32
    q_ref[...] = y[:, :dk].astype(q_ref.dtype)
    k_ref[...] = y[:, dk:2 * dk].astype(k_ref.dtype)
    v_ref[...] = y[:, 2 * dk:].astype(v_ref.dtype)


# ----------------------------------------------------------------------------
# Kernel 2: flash-style attention + sigmoid + row-sum.
# Grid = (num_q_tiles, num_kv_tiles); kv axis is the innermost reduction.
# When kv_resident, K/V refs hold the whole (n_pad, dk) arrays (DMA'd once,
# constant index_map) and the kv tile is sliced in-kernel.
# ----------------------------------------------------------------------------
def _flash_rowsum_kernel(q_ref, k_ref, v_ref, o_ref,
                         m_sc, l_sc, acc_sc, *,
                         tk, n_real, n_pad, compute_dtype, kv_resident):
    ki = pl.program_id(1)

    @pl.when(ki == 0)
    def _init():
        m_sc[...] = jnp.full_like(m_sc, -jnp.inf)
        l_sc[...] = jnp.zeros_like(l_sc)
        acc_sc[...] = jnp.zeros_like(acc_sc)

    if kv_resident:
        off = pl.multiple_of(ki * tk, tk)
        k_t = k_ref[pl.ds(off, tk), :]
        v_t = v_ref[pl.ds(off, tk), :]
    else:
        k_t = k_ref[...]
        v_t = v_ref[...]

    # scores tile = Q_tile @ K_tile^T, contracting dk directly (no k.T / XLU
    # transpose). Q already carries log2(e)/sqrt(dk), so s is in log2 domain.
    s = jax.lax.dot_general(
        q_ref[...], k_t,
        dimension_numbers=(((1,), (1,)), ((), ())),
        preferred_element_type=jnp.float32)                  # (tq, tk) f32

    if n_pad != n_real:
        # Mask padded key columns (zero-padded X rows => logits 0, not -inf).
        col = ki * tk + jax.lax.broadcasted_iota(jnp.int32, s.shape, 1)
        s = jnp.where(col < n_real, s, jnp.float32(-1e30))

    # Online softmax with lane-dense (tq, 128) running state.
    m_prev = m_sc[...]
    m_new = jnp.maximum(m_prev, jnp.max(s, axis=1, keepdims=True))
    alpha = jnp.exp2(m_prev - m_new)                         # rescale old state
    # TODO(synk): on v6e/v7x the exp2 could be done in bf16 if the EUP shows
    # up as a co-bottleneck; kept f32 here for accuracy on all generations.
    p = jnp.exp2(s - m_new[:, :1])                           # unnormalized probs

    l_sc[...] = alpha * l_sc[...] + jnp.sum(p, axis=1, keepdims=True)
    acc_sc[...] = alpha[:, :1] * acc_sc[...] + jnp.dot(
        p.astype(compute_dtype), v_t,
        preferred_element_type=jnp.float32)                  # (tq, dk) f32
    m_sc[...] = m_new

    @pl.when(ki == pl.num_programs(1) - 1)
    def _finalize():
        # attn @ V = acc / l ; exact reciprocal (runs once per q-tile).
        z = acc_sc[...] * pl.reciprocal(l_sc[:, :1], approx=False)
        matt = jax.nn.sigmoid(z)                             # (tq, dk)
        rowsum = jnp.sum(matt, axis=1, keepdims=True)        # (tq, 1)
        # Lane-dense (tq, 128) slab: unmasked stores; rank-1 payload only.
        o_ref[...] = jnp.broadcast_to(rowsum, o_ref.shape)


# ----------------------------------------------------------------------------
# Wrapper: faithful forward() of AttentionModule.
# ----------------------------------------------------------------------------
def attention_module(x, wq, wk, wv, dk, *,
                     compute_dtype=jnp.bfloat16,
                     tq_max=256, tk_max=512,
                     kv_resident_budget_bytes=8 * 1024 * 1024,
                     materialize_full=True):
    """x: (N, D) f32; wq/wk/wv: (dk, D) nn.Linear weights (PyTorch layout)."""
    N, D = x.shape
    cd_bytes = jnp.dtype(compute_dtype).itemsize

    # ---- robust tiling: multiples of 8, pad N to the tile grid -------------
    tq = min(tq_max, _round_up(N, 8))
    tk = min(tk_max, _round_up(N, 8))
    if tk % tq != 0:                  # one padded length must serve both axes
        tk = tq
    n_pad = _round_up(N, max(tq, tk))
    x_p = x if n_pad == N else jnp.pad(x, ((0, n_pad - N), (0, 0)))

    # Fold log2(e)/sqrt(dk) into Wq (exp2 trick) and fuse the three projection
    # weights into a single (D, 3*dk) operand so stage 1 issues one matmul.
    scale = _LOG2E / math.sqrt(float(dk))
    w_qkv = jnp.concatenate([wq.T * scale, wk.T, wv.T],
                            axis=1).astype(compute_dtype)    # (D, 3*dk)

    # ---- stage 1: fused QKV projection --------------------------------------
    tm = tq                                                   # divides n_pad
    q_s, k, v = pl.pallas_call(
        functools.partial(_project_qkv_kernel, dk=dk),
        out_shape=(
            jax.ShapeDtypeStruct((n_pad, dk), compute_dtype),
            jax.ShapeDtypeStruct((n_pad, dk), compute_dtype),
            jax.ShapeDtypeStruct((n_pad, dk), compute_dtype),
        ),
        grid_spec=pltpu.PrefetchScalarGridSpec(
            num_scalar_prefetch=0,
            grid=(n_pad // tm,),
            in_specs=[
                pl.BlockSpec((tm, D), lambda i: (i, 0)),
                pl.BlockSpec((D, 3 * dk), lambda i: (0, 0)),  # weights resident
            ],
            out_specs=(
                pl.BlockSpec((tm, dk), lambda i: (i, 0)),
                pl.BlockSpec((tm, dk), lambda i: (i, 0)),
                pl.BlockSpec((tm, dk), lambda i: (i, 0)),
            ),
        ),
        compiler_params=pltpu.CompilerParams(
            dimension_semantics=("parallel",),
            vmem_limit_bytes=32 * 1024 * 1024,   # v5e scoped default is 16 MiB
        ),
    )(x_p, w_qkv)

    # ---- stage 2: flash attention + sigmoid + row-sum -----------------------
    # Keep K/V fully VMEM-resident (DMA'd once) when 2x(double-buffered) K+V
    # fit a conservative budget that is safe on v7x's 32 MiB scoped default.
    kv_resident = (2 * 2 * n_pad * dk * cd_bytes) <= kv_resident_budget_bytes
    if kv_resident:
        k_spec = pl.BlockSpec((n_pad, dk), lambda qi, ki: (0, 0))
        v_spec = pl.BlockSpec((n_pad, dk), lambda qi, ki: (0, 0))
    else:
        k_spec = pl.BlockSpec((tk, dk), lambda qi, ki: (ki, 0))
        v_spec = pl.BlockSpec((tk, dk), lambda qi, ki: (ki, 0))

    slab = pl.pallas_call(
        functools.partial(_flash_rowsum_kernel,
                          tk=tk, n_real=N, n_pad=n_pad,
                          compute_dtype=compute_dtype, kv_resident=kv_resident),
        out_shape=jax.ShapeDtypeStruct((n_pad, _OUT_LANES), jnp.float32),
        grid_spec=pltpu.PrefetchScalarGridSpec(
            num_scalar_prefetch=0,
            grid=(n_pad // tq, n_pad // tk),
            in_specs=[
                pl.BlockSpec((tq, dk), lambda qi, ki: (qi, 0)),
                k_spec,
                v_spec,
            ],
            out_specs=pl.BlockSpec((tq, _OUT_LANES), lambda qi, ki: (qi, 0)),
            scratch_shapes=[
                pltpu.VMEM((tq, _OUT_LANES), jnp.float32),  # running max m (lane-dense)
                pltpu.VMEM((tq, _OUT_LANES), jnp.float32),  # running denom l
                pltpu.VMEM((tq, dk), jnp.float32),          # running numerator
            ],
        ),
        compiler_params=pltpu.CompilerParams(
            dimension_semantics=("parallel", "arbitrary"),  # q-tiles shard on v7x TCs
            vmem_limit_bytes=32 * 1024 * 1024,              # within v7x 64 MiB physical
        ),
    )(q_s, k, v)

    rowsum = slab[:N, :1]                                   # (N, 1) rank-1 payload
    if materialize_full:
        # Matt.unsqueeze(1).repeat(1, N): broadcast in the wrapper so the
        # kernel never writes N^2 bytes to HBM (caller can fuse / avoid it).
        return jnp.broadcast_to(rowsum, (N, N))
    return rowsum


# ----------------------------------------------------------------------------
# Pure-JAX reference (mirrors the PyTorch module exactly, in f32).
# ----------------------------------------------------------------------------
def reference_jax(x, wq, wk, wv, dk):
    q = x @ wq.T
    k = x @ wk.T
    v = x @ wv.T
    scores = (q @ k.T) / jnp.sqrt(jnp.float32(dk))
    attn = jax.nn.softmax(scores, axis=1)
    matt = jax.nn.sigmoid(attn @ v)
    rowsum = matt @ jnp.ones((dk, 1), jnp.float32)          # (N, 1)
    return jnp.tile(rowsum, (1, x.shape[0]))                # (N, N)


if __name__ == "__main__":
    N, D, DK = 8, 32, 64   # seq=8, input_dim=32, dk=64

    key = jax.random.PRNGKey(0)
    kx, kq, kk, kv_ = jax.random.split(key, 4)

    x = jax.random.normal(kx, (N, D), dtype=jnp.float32)
    # nn.Linear(D, DK) weights in PyTorch layout (DK, D).
    wq = jax.random.normal(kq, (DK, D), dtype=jnp.float32) * 0.1
    wk = jax.random.normal(kk, (DK, D), dtype=jnp.float32) * 0.1
    wv = jax.random.normal(kv_, (DK, D), dtype=jnp.float32) * 0.1

    # Default bf16 MXU operands (f32 accumulation); tolerance sized for bf16.
    out = attention_module(x, wq, wk, wv, DK)
    out = jax.block_until_ready(out)
    ref = reference_jax(x, wq, wk, wv, DK)
    assert out.shape == (N, N)
    assert jnp.allclose(out, ref, atol=2e-2, rtol=2e-2), "bf16 mismatch vs reference"

    # Exercise the padding/masking path (N not a multiple of 8) in f32.
    N2 = 11
    x2 = jax.random.normal(kx, (N2, D), dtype=jnp.float32)
    out2 = attention_module(x2, wq, wk, wv, DK, compute_dtype=jnp.float32)
    out2 = jax.block_until_ready(out2)
    ref2 = reference_jax(x2, wq, wk, wv, DK)
    assert out2.shape == (N2, N2)
    assert jnp.allclose(out2, ref2, atol=1e-3, rtol=1e-3), "f32 mismatch vs reference"

    print("KERNEL_OK")
</pallas_src>

<mosaic_0001>
module attributes {stable_mosaic.version = 11 : i64} {
  func.func @_project_qkv_kernel(%arg0: i32, %arg1: memref<8x32xf32, #tpu.memory_space<vmem>>, %arg2: memref<32x192xbf16, #tpu.memory_space<vmem>>, %arg3: memref<8x64xbf16, #tpu.memory_space<vmem>>, %arg4: memref<8x64xbf16, #tpu.memory_space<vmem>>, %arg5: memref<8x64xbf16, #tpu.memory_space<vmem>>) attributes {dimension_semantics = [#tpu.dimension_semantics<parallel>], iteration_bounds = array<i64: 1>, scalar_prefetch = 0 : i64, scratch_operands = 0 : i64, tpu.core_type = #tpu.core_type<tc>, window_params = [{transform_indices = @transform_0, window_bounds = array<i64: 8, 32>}, {pipeline_mode = #tpu.pipeline_mode<synchronous>, transform_indices = @transform_1, window_bounds = array<i64: 32, 192>}, {transform_indices = @transform_2, window_bounds = array<i64: 8, 64>}, {transform_indices = @transform_3, window_bounds = array<i64: 8, 64>}, {transform_indices = @transform_4, window_bounds = array<i64: 8, 64>}]} {
    %c0 = arith.constant 0 : index
    %c0_0 = arith.constant 0 : index
    %0 = vector.load %arg1[%c0, %c0_0] : memref<8x32xf32, #tpu.memory_space<vmem>>, vector<8x32xf32>
    %1 = arith.truncf %0 : vector<8x32xf32> to vector<8x32xbf16>
    %c0_1 = arith.constant 0 : index
    %c0_2 = arith.constant 0 : index
    %2 = vector.load %arg2[%c0_1, %c0_2] : memref<32x192xbf16, #tpu.memory_space<vmem>>, vector<32x192xbf16>
    %cst = arith.constant dense<0.000000e+00> : vector<8x192xf32>
    %3 = tpu.matmul %1, %2, %cst {dimension_numbers = #tpu.dot_dimension_numbers<[1], [0], [0], [1], [0, 0, 1, 1], [], []>} : vector<8x32xbf16>, vector<32x192xbf16>, vector<8x192xf32> -> vector<8x192xf32>
    %4 = vector.extract_strided_slice %3 {offsets = [0, 0], sizes = [8, 64], strides = [1, 1]} : vector<8x192xf32> to vector<8x64xf32>
    %5 = arith.truncf %4 : vector<8x64xf32> to vector<8x64xbf16>
    %c0_3 = arith.constant 0 : index
    %c0_4 = arith.constant 0 : index
    %6 = vector.load %arg3[%c0_3, %c0_4] : memref<8x64xbf16, #tpu.memory_space<vmem>>, vector<8x64xbf16>
    tpu.vector_store %arg3[%c0_3, %c0_4], %5 {strides = array<i32>} : memref<8x64xbf16, #tpu.memory_space<vmem>>, vector<8x64xbf16>,
    %7 = vector.extract_strided_slice %3 {offsets = [0, 64], sizes = [8, 64], strides = [1, 1]} : vector<8x192xf32> to vector<8x64xf32>
    %8 = arith.truncf %7 : vector<8x64xf32> to vector<8x64xbf16>
    %c0_5 = arith.constant 0 : index
    %c0_6 = arith.constant 0 : index
    %9 = vector.load %arg4[%c0_5, %c0_6] : memref<8x64xbf16, #tpu.memory_space<vmem>>, vector<8x64xbf16>
    tpu.vector_store %arg4[%c0_5, %c0_6], %8 {strides = array<i32>} : memref<8x64xbf16, #tpu.memory_space<vmem>>, vector<8x64xbf16>,
    %10 = vector.extract_strided_slice %3 {offsets = [0, 128], sizes = [8, 64], strides = [1, 1]} : vector<8x192xf32> to vector<8x64xf32>
    %11 = arith.truncf %10 : vector<8x64xf32> to vector<8x64xbf16>
    %c0_7 = arith.constant 0 : index
    %c0_8 = arith.constant 0 : index
    %12 = vector.load %arg5[%c0_7, %c0_8] : memref<8x64xbf16, #tpu.memory_space<vmem>>, vector<8x64xbf16>
    tpu.vector_store %arg5[%c0_7, %c0_8], %11 {strides = array<i32>} : memref<8x64xbf16, #tpu.memory_space<vmem>>, vector<8x64xbf16>,
    return
  }
  func.func @transform_0(%arg0: i32) -> (i32, i32) {
    %c0_i32 = arith.constant 0 : i32
    %c0_i32_0 = arith.constant 0 : i32
    return %arg0, %c0_i32 : i32, i32
  }
  func.func @transform_1(%arg0: i32) -> (i32, i32) {
    %c0_i32 = arith.constant 0 : i32
    %c0_i32_0 = arith.constant 0 : i32
    %c0_i32_1 = arith.constant 0 : i32
    return %c0_i32, %c0_i32_0 : i32, i32
  }
  func.func @transform_2(%arg0: i32) -> (i32, i32) {
    %c0_i32 = arith.constant 0 : i32
    %c0_i32_0 = arith.constant 0 : i32
    return %arg0, %c0_i32 : i32, i32
  }
  func.func @transform_3(%arg0: i32) -> (i32, i32) {
    %c0_i32 = arith.constant 0 : i32
    %c0_i32_0 = arith.constant 0 : i32
    return %arg0, %c0_i32 : i32, i32
  }
  func.func @transform_4(%arg0: i32) -> (i32, i32) {
    %c0_i32 = arith.constant 0 : i32
    %c0_i32_0 = arith.constant 0 : i32
    return %arg0, %c0_i32 : i32, i32
  }
}

</mosaic_0001>

<bundles_post_ra>
// kernel: tpu_custom_call.1
= control target key start
LH: loop header
LB: loop body
LE: loop exit
PB: predicated region body
PF: predicated region fallthrough
CT: control target
= control target key end

     0   :  { %10 = vsyncpa [#allocation3], 0  ;;  %s413_s0 = inlined_call_operand.hbm [shape: f32[8,32], index: 0, kind: input, shape index: {}]   ;;  %s414_s1 = inlined_call_operand.hbm [shape: bf16[32,192], index: 1, kind: input, shape index: {}]   ;;  %s415_s2 = inlined_call_operand.hbm [shape: bf16[8,64], index: 2, kind: output, shape index: {0}]   ;;  %s416_s3 = inlined_call_operand.hbm [shape: bf16[8,64], index: 3, kind: output, shape index: {1}]   ;;  %s417_s4 = inlined_call_operand.hbm [shape: bf16[8,64], index: 4, kind: output, shape index: {2}]  }
   0x1   :  { %11 = vsyncpa [#allocation6], 0 }
   0x2   :  { %12 = vsyncpa [#allocation4], 0 }
   0x3   :  { %13 = vsyncpa [#allocation9], 0  ;;  %s309_s15 = smov [#allocation2]   ;;  %s310_s17 = smov [#allocation5]  }
   0x4   :  { %s20_s16 = sshll.u32 %s309_s15, 4  ;;  %s29_s18 = sshll.u32 %s310_s17, 4  ;;  %s21_s16 = int_to_ptr.vmem [resolvable:$true] %s20_s16  ;;  %s343_s18 = int_to_ptr.vmem [resolvable:$true] %s29_s18 }
   0x5   :  { %s191_s21 = scalar_lea.hbm %s413_s0, 128 }
   0x6   :  { %p192_p0 = scmp.ne.s32.totalorder %s413_s0, %s191_s21  ;;  %p195_p1 = scmp.lt.u32.totalorder %s191_s21, %s413_s0 }
   0x8   :  { %p197_p2 = pnand %p195_p1, %p192_p0 }
   0xa   :  { %200 = shalt.err (!%p197_p2)
}
   0xb   :  { %s201_s26 = scalar_lea.vmem %s21_s16, 128  ;;  %p206_p4 = scmp.lt.s32.totalorder %s21_s16, %s21_s16 }
   0xc   :  { %p202_p3 = scmp.ne.s32.totalorder %s21_s16, %s201_s26  ;;  %p207_p5 = scmp.lt.s32.totalorder %s201_s26, %s201_s26 }
   0xe   :  { %p208_p6 = por %p207_p5, %p206_p4 }
  0x10   :  { %p209_p7 = pnand %p208_p6, %p202_p3 }
  0x12   :  { %212 = shalt.err (!%p209_p7)
}
  0x13   :  { %23 = dma.hbm_to_vmem [thread:$0]  %s413_s0, 128, %s21_s16, [#allocation3]  }
  0x14   :  { %s213_s5 = scalar_lea.hbm %s414_s1, 512 }
  0x15   :  { %p214_p8 = scmp.ne.s32.totalorder %s414_s1, %s213_s5  ;;  %p217_p9 = scmp.lt.u32.totalorder %s213_s5, %s414_s1 }
  0x17   :  { %p219_p10 = pnand %p217_p9, %p214_p8 }
  0x19   :  { %222 = shalt.err (!%p219_p10)
}
  0x1a   :  { %s223_s10 = scalar_lea.vmem %s343_s18, 512  ;;  %p228_p12 = scmp.lt.s32.totalorder %s343_s18, %s343_s18 }
  0x1b   :  { %p224_p11 = scmp.ne.s32.totalorder %s343_s18, %s223_s10  ;;  %p229_p13 = scmp.lt.s32.totalorder %s223_s10, %s223_s10 }
  0x1d   :  { %p230_p0 = por %p229_p13, %p228_p12 }
  0x1f   :  { %p231_p1 = pnand %p230_p0, %p224_p11 }
  0x21   :  { %234 = shalt.err (!%p231_p1)
}
  0x22   :  { %s311_s0 = smov 128   ;;  %s312_s11 = smov 8  }
  0x23   :  { %35 = dma.hbm_to_vmem [thread:$0]  %s414_s1, 512, %s343_s18, [#allocation6], %s311_s0, %s311_s0, %s312_s11  }
  0x24   :  { %301 = dma.done.wait [#allocation3], 128  }
  0x25   :  { %302 = vsyncadd [#allocation3], 4294967168 }
  0x26   :  { %303 = dma.done.wait [#allocation6], 512  }
  0x27   :  { %304 = vsyncadd [#allocation6], 4294966784  ;;  %v313_v0 = vmov 0   ;;  %v185_v1 = vld [vmem:[#allocation5 + $0x4] ss:$8 sps:$4 sm:$0xff]   ;;  %v43_v5 = vld [vmem:[#allocation2] sm:$0xff] }
  0x28   :  { %105 = vmatprep.mubr.bf16.mxu0 %v313_v0  ;;  %v187_v2 = vld [vmem:[#allocation5] ss:$8 sps:$4 sm:$0xff]   ;;  %73 = vmatprep.subr.bf16.mxu0 %v185_v1  ;;  %v188_v3 = vld [vmem:[#allocation5 + $0x14] ss:$8 sps:$4 sm:$0xff]   ;;  %v190_v4 = vld [vmem:[#allocation5 + $0x10] ss:$8 sps:$4 sm:$0xff]   ;;  %v44_v6 = vpack.c.bf16 %v43_v5, %v43_v5 }
  0x29   :  { %74 = vmatpush1.bf16.msra.mxu0 %v187_v2  ;;  %vm69_vm0 = vcmask 261120   ;;  %s314_s14 = smov [#allocation7]   ;;  %vm115_vm1 = vcmask 519168   ;;  %s315_s15 = smov 64  }
  0x2a   :  { %75 = vmatprep.subr.bf16.mxu0 %v188_v3  ;;  %s132_s1 = sshll.u32 %s314_s14, 4  ;;  %s133_s1 = int_to_ptr.vmem [resolvable:$true] %s132_s1 }
  0x2b   :  { %s235_s16 = scalar_lea.vmem %s133_s1, 64  ;;  %p240_p3 = scmp.lt.s32.totalorder %s133_s1, %s133_s1 }
  0x2c   :  { %p236_p2 = scmp.ne.s32.totalorder %s133_s1, %s235_s16  ;;  %p241_p4 = scmp.lt.s32.totalorder %s235_s16, %s235_s16 }
  0x2d   :  { %76 = vmatpush1.bf16.msra.mxu0 %v190_v4 }
  0x2e   :  { %p242_p5 = por %p241_p4, %p240_p3 }
  0x30   :  { %173 = vmatmul.mubr.msk.bf16.vlgmr.msra.gmra.mrb[0].mxu0 %vm69_vm0, %v44_v6  ;;  %p243_p6 = pnand %p242_p5, %p236_p2 }
 0x103   :  { %v107_v7 = vpop.f32.mrb[0].mxu0 }
 0x104   :  { %v114_v8 = vpack.c.bf16 %v107_v7, %v107_v7  ;;  %v109_v9 = vpop.f32.mrb[1].mxu0 }
 0x105   :  { %v124_v10 = vpack.c.bf16 %v109_v9, %v109_v9  ;;  %v111_v11 = vpop.f32.mrb[2].mxu0 }
 0x106   :  { %v112_v12 = vpop.f32.mrb[3].mxu0  ;;  %120 = vrot.lane.b32.xlu0 %v114_v8, %s315_s15  ;;  %116 = vst.msk [vmem:[#allocation7] sm:$0xf] %vm115_vm1, %v114_v8 }
 0x107   :  { %125 = vst.msk [vmem:[#allocation10] sm:$0xf] %vm115_vm1, %v124_v10 }
 0x108   :  { %246 = shalt.err (!%p243_p6)
}
 0x109   :  { %s247_s19 = scalar_lea.hbm %s415_s2, 64 }
 0x10a   :  { %p248_p7 = scmp.ne.s32.totalorder %s415_s2, %s247_s19  ;;  %p251_p8 = scmp.lt.u32.totalorder %s247_s19, %s415_s2 }
 0x10c   :  { %p253_p9 = pnand %p251_p8, %p248_p7 }
 0x10e   :  { %256 = shalt.err (!%p253_p9)
}
 0x10f   :  { %135 = dma.vmem_to_hbm [thread:$0]  %s133_s1, 64, %s415_s2, [#allocation4]  }
 0x110   :  { %s316_s26 = smov [#allocation8]   ;;  %s317_s28 = smov [#allocation10]  }
 0x111   :  { %s142_s27 = sshll.u32 %s316_s26, 4  ;;  %s152_s29 = sshll.u32 %s317_s28, 4  ;;  %s143_s27 = int_to_ptr.vmem [resolvable:$true] %s142_s27  ;;  %s153_s29 = int_to_ptr.vmem [resolvable:$true] %s152_s29 }
 0x112   :  { %s257_s30 = scalar_lea.vmem %s143_s27, 64  ;;  %p262_p11 = scmp.lt.s32.totalorder %s143_s27, %s143_s27 }
 0x113   :  { %p258_p10 = scmp.ne.s32.totalorder %s143_s27, %s257_s30  ;;  %p263_p12 = scmp.lt.s32.totalorder %s257_s30, %s257_s30 }
 0x115   :  { %p264_p13 = por %p263_p12, %p262_p11 }
 0x117   :  { %p265_p0 = pnand %p264_p13, %p258_p10 }
 0x178   :  { %v121_v13 = vpop.permute.xlu0 %120 }
 0x179   :  { %123 = vst.msk [vmem:[#allocation8] sm:$0xf] %vm115_vm1, %v121_v13 }
 0x17a   :  { %268 = shalt.err (!%p265_p0)
}
 0x17b   :  { %s269_s2 = scalar_lea.hbm %s416_s3, 64 }
 0x17c   :  { %p270_p1 = scmp.ne.s32.totalorder %s416_s3, %s269_s2  ;;  %p273_p2 = scmp.lt.u32.totalorder %s269_s2, %s416_s3 }
 0x17e   :  { %p275_p3 = pnand %p273_p2, %p270_p1 }
 0x180   :  { %278 = shalt.err (!%p275_p3)
}
 0x181   :  { %145 = dma.vmem_to_hbm [thread:$0]  %s143_s27, 64, %s416_s3, [#allocation9]  }
 0x182   :  { %s279_s12 = scalar_lea.vmem %s153_s29, 64  ;;  %p284_p5 = scmp.lt.s32.totalorder %s153_s29, %s153_s29 }
 0x183   :  { %p280_p4 = scmp.ne.s32.totalorder %s153_s29, %s279_s12  ;;  %p285_p6 = scmp.lt.s32.totalorder %s279_s12, %s279_s12 }
 0x185   :  { %p286_p7 = por %p285_p6, %p284_p5 }
 0x187   :  { %p287_p8 = pnand %p286_p7, %p280_p4 }
 0x189   :  { %290 = shalt.err (!%p287_p8)
}
 0x18a   :  { %s291_s1 = scalar_lea.hbm %s417_s4, 64 }
 0x18b   :  { %p292_p9 = scmp.ne.s32.totalorder %s417_s4, %s291_s1  ;;  %p295_p10 = scmp.lt.u32.totalorder %s291_s1, %s417_s4 }
 0x18d   :  { %p297_p11 = pnand %p295_p10, %p292_p9 }
 0x18f   :  { %300 = shalt.err (!%p297_p11)
}
 0x190   :  { %155 = dma.vmem_to_hbm [thread:$0]  %s153_s29, 64, %s417_s4, [#allocation9]  }
 0x191   :  { %305 = dma.done.wait [#allocation4], 64  }
 0x192   :  { %306 = vsyncadd [#allocation4], 4294967232 }
 0x193   :  { %307 = dma.done.wait [#allocation9], 128  }
 0x194   :  { %308 = vsyncadd [#allocation9], 4294967168 }
 0x195   :  { %165 = vsyncpa [#allocation3], 1 }
 0x196   :  { %166 = vsyncpa [#allocation6], 1 }
 0x197   :  { %167 = vsyncpa [#allocation4], 1 }
 0x198   :  { %168 = vsyncpa [#allocation9], 1 }

</bundles_post_ra>
